<compile_context>
chip_gen: v5e
topology: v5e:2x2
jax: 0.10.0
libtpu: 0.0.40
codegen_flags: <defaults>
</compile_context>

<pallas_src>
import jax
import jax.numpy as jnp
from jax.experimental import pallas as pl
from jax.experimental.pallas import tpu as pltpu

_NEG = -1.0e4  # "minus infinity" for pooling SiLU outputs (SiLU >= -0.2785)


# ----------------------------- helpers ----------------------------------------

def _incremental_radii(pool_ks):
    """Incremental 'same' max-pool radii so the pools can be cascaded."""
    radii = []
    prev = 1
    for k in pool_ks:
        if k % 2 != 1 or k < prev:
            raise ValueError("SPP cascade requires odd, non-decreasing kernel sizes")
        radii.append((k - prev) // 2)
        prev = k
    return tuple(radii)


def _pool_dtype_for_backend():
    """bf16 pooling on chips with a bf16 VPU (v6e/v7x); f32 elsewhere (v5e, ...)."""
    try:
        kind = jax.devices()[0].device_kind.lower()
    except Exception:
        return jnp.float32
    return jnp.bfloat16 if ("v6" in kind or "v7" in kind or "7x" in kind) else jnp.float32


def _vmem_limit_bytes(C1, C_, C2, nb, Lf, pool_dtype):
    """Explicit scoped-VMEM request sized from the actual blocks (+2x headroom)."""
    f32, bf16 = 4, 2
    pb = 2 if pool_dtype == jnp.bfloat16 else 4
    x_blk = C1 * Lf * bf16                      # double-buffered input image block
    o_blk = C2 * Lf * f32                       # double-buffered output block
    wgt = (C_ * C1 + nb * C2 * C_) * bf16 + (C_ + C2 + Lf) * f32
    acc = C2 * Lf * f32                         # cv2 scratch accumulator
    pool = 8 * C_ * Lf * pb                     # y/t0/stage temporaries + rolls in flight
    est = 2 * (x_blk + o_blk + wgt) + acc + pool
    return int(min(max(2 * est, 16 * 2**20), 48 * 2**20))


# ----------------------------- fused SPP kernel -------------------------------

def _make_spp_kernel(Wp, Lf, radii, pool_dtype):
    mm_dtype = jnp.bfloat16  # MXU operand dtype (all TPU generations)

    def kernel(neg_ref, x_ref, w1_ref, b1_ref, w2_ref, b2_ref, o_ref, acc_ref):
        f32 = jnp.float32
        c_ = w1_ref.shape[0]

        def silu(z):
            return z * pl.reciprocal(1.0 + jnp.exp(-z), approx=True)

        # ---- cv1: 1x1 conv (bf16 MXU, f32 acc; BN scale pre-folded) + SiLU ----
        y = jnp.dot(w1_ref[...], x_ref[0], preferred_element_type=f32)      # (C_, Lf)
        y = silu(y + b1_ref[...])

        # Push halo/tail pixels to ~-1e4 (single add) -> cascade needs no masks.
        y = y + jnp.broadcast_to(neg_ref[...], (c_, Lf))
        t0 = y.astype(pool_dtype)

        # ---- separable stride-1 'same' max pool of radius p: pure rolls + max ----
        def pool_stage(t, p):
            r = t
            for s in range(1, p + 1):                                        # along W
                r = jnp.maximum(r, pltpu.roll(t, shift=(Lf - s) % Lf, axis=1))
                r = jnp.maximum(r, pltpu.roll(t, shift=s % Lf, axis=1))
            t2 = r
            for s in range(1, p + 1):                                        # along H
                r = jnp.maximum(r, pltpu.roll(t2, shift=(Lf - s * Wp) % Lf, axis=1))
                r = jnp.maximum(r, pltpu.roll(t2, shift=(s * Wp) % Lf, axis=1))
            return r

        # ---- pool cascade + implicit concat + cv2 (per-branch dots into scratch) ----
        acc_ref[...] = jnp.dot(w2_ref[0], t0.astype(mm_dtype),
                               preferred_element_type=f32)                   # (C2, Lf)
        t = t0
        for j, p in enumerate(radii):
            t = pool_stage(t, p)                                             # cascade stage
            acc_ref[...] += jnp.dot(w2_ref[j + 1], t.astype(mm_dtype),
                                    preferred_element_type=f32)

        o_ref[0] = silu(acc_ref[...] + b2_ref[...]).astype(o_ref.dtype)

    return kernel


def spp_forward(params, x_nchw):
    """SPP forward on NCHW input, fully fused in one pallas_call per image."""
    N, C1, H, W = x_nchw.shape
    C_ = params["w1"].shape[0]
    nb, C2, _ = params["w2"].shape
    radii = _incremental_radii(params["pool_ks"])
    assert nb == len(radii) + 1
    R = sum(radii)

    Hp, Wp = H + R, W + R                       # one-sided halo (right/bottom)
    L = Hp * Wp
    Lf = ((L + 127) // 128) * 128               # lane-align the flattened spatial axis

    # Spatial zero-pad + flatten + tail-pad; cast the streamed input to bf16.
    xp = jnp.pad(x_nchw, ((0, 0), (0, 0), (0, R), (0, R))).reshape(N, C1, L)
    if Lf > L:
        xp = jnp.pad(xp, ((0, 0), (0, 0), (0, Lf - L)))
    xp = xp.astype(jnp.bfloat16)

    # 0 on image pixels, -1e4 on halo/tail pixels (added to cv1's SiLU output).
    idx = jnp.arange(Lf)
    inside = ((idx // Wp) < H) & ((idx % Wp) < W) & (idx < L)
    pad_neg = jnp.where(inside, 0.0, _NEG).astype(jnp.float32).reshape(1, Lf)

    pool_dtype = _pool_dtype_for_backend()
    kernel = _make_spp_kernel(Wp, Lf, radii, pool_dtype)

    out = pl.pallas_call(
        kernel,
        out_shape=jax.ShapeDtypeStruct((N, C2, Lf), x_nchw.dtype),
        grid=(N,),
        in_specs=[
            pl.BlockSpec((1, Lf), lambda n: (0, 0)),                  # halo sentinel row
            pl.BlockSpec((1, C1, Lf), lambda n: (n, 0, 0)),           # one padded image
            # Constant-index weight/bias blocks (fetched once by the pipeline).
            # v7x-only knob: pipeline_mode=pl.Buffered(1) here reclaims the 2nd buffer.
            pl.BlockSpec((C_, C1), lambda n: (0, 0)),                 # w1 (BN folded, bf16)
            pl.BlockSpec((C_, 1), lambda n: (0, 0)),                  # bn1 bias
            pl.BlockSpec((nb, C2, C_), lambda n: (0, 0, 0)),          # w2 per branch (bf16)
            pl.BlockSpec((C2, 1), lambda n: (0, 0)),                  # bn2 bias
        ],
        out_specs=pl.BlockSpec((1, C2, Lf), lambda n: (n, 0, 0)),
        scratch_shapes=[pltpu.VMEM((C2, Lf), jnp.float32)],           # cv2 accumulator
        compiler_params=pltpu.CompilerParams(
            dimension_semantics=("parallel",),
            vmem_limit_bytes=_vmem_limit_bytes(C1, C_, C2, nb, Lf, pool_dtype),
        ),
    )(pad_neg, xp, params["w1"], params["b1"], params["w2"], params["b2"])

    # Drop halo / lane-alignment columns (they carry sentinel-derived garbage).
    out = out[:, :, :L].reshape(N, C2, Hp, Wp)[:, :, :H, :W]
    return out


# ----------------------------- parameter construction -------------------------

def init_spp_params(key, c1, c2, pool_ks=(5, 9, 13), eps=1e-5):
    c_ = c1 // 2
    nb = len(pool_ks) + 1
    cin2 = c_ * nb
    ks = jax.random.split(key, 10)

    def bn_fold(kg, kb, km, kv, c):
        gamma = jax.random.uniform(kg, (c,), jnp.float32, 0.5, 1.5)
        beta = jax.random.normal(kb, (c,), jnp.float32) * 0.1
        mean = jax.random.normal(km, (c,), jnp.float32) * 0.1
        var = jax.random.uniform(kv, (c,), jnp.float32, 0.5, 1.5)
        scale = gamma / jnp.sqrt(var + eps)
        bias = beta - mean * scale
        return scale, bias

    # PyTorch conv weights (Cout, Cin, 1, 1) -> stored as (Cout, Cin).
    w1 = jax.random.normal(ks[0], (c_, c1), jnp.float32) / jnp.sqrt(c1)
    s1, b1 = bn_fold(ks[1], ks[2], ks[3], ks[4], c_)
    w2_full = jax.random.normal(ks[5], (c2, cin2), jnp.float32) / jnp.sqrt(cin2)
    s2, b2 = bn_fold(ks[6], ks[7], ks[8], ks[9], c2)

    # Fold the BN scale into the conv weights (exact algebra), split cv2's weight
    # into one (C2, C_) slice per concat branch, store matmul weights in bf16.
    w1_f = (w1 * s1[:, None]).astype(jnp.bfloat16)
    w2_f = w2_full * s2[:, None]
    w2_b = jnp.stack([w2_f[:, i * c_:(i + 1) * c_] for i in range(nb)], 0).astype(jnp.bfloat16)

    _incremental_radii(pool_ks)  # validate cascade assumption (odd, ascending)
    return dict(w1=w1_f, b1=b1.reshape(c_, 1),
                w2=w2_b, b2=b2.reshape(c2, 1),
                pool_ks=tuple(pool_ks))


# ----------------------------- pure-JAX reference -----------------------------

def spp_reference(params, x_nchw):
    def cbs(v, w, b):                          # folded conv+BN + exact-sigmoid SiLU
        y = jnp.einsum("oc,nchw->nohw", w.astype(jnp.float32), v)
        y = y + b.reshape(1, -1, 1, 1)
        return y * jax.nn.sigmoid(y)

    def mp(v, k):
        p = k // 2
        return jax.lax.reduce_window(v, -jnp.inf, jax.lax.max,
                                     (1, 1, k, k), (1, 1, 1, 1),
                                     [(0, 0), (0, 0), (p, p), (p, p)])

    y = cbs(x_nchw, params["w1"], params["b1"])
    feats = [y] + [mp(y, k) for k in params["pool_ks"]]
    cat = jnp.concatenate(feats, axis=1)
    w2_full = jnp.concatenate(list(params["w2"]), axis=1)
    return cbs(cat, w2_full, params["b2"])


if __name__ == "__main__":
    key = jax.random.PRNGKey(0)
    kp, kx = jax.random.split(key)
    c1, c2 = 4, 8
    params = init_spp_params(kp, c1, c2)

    x = jax.random.normal(kx, (2, c1, 16, 16), jnp.float32)

    out = jax.block_until_ready(spp_forward(params, x))
    assert out.shape == (2, c2, 16, 16), out.shape

    ref = spp_reference(params, x)
    # Tolerance covers bf16 matmul operands / optional bf16 pooling / EUP-approx
    # reciprocal in SiLU; weights are shared (bf16) between kernel and reference.
    if not jnp.allclose(out, ref, rtol=2e-2, atol=2e-2):
        err = jnp.max(jnp.abs(out - ref))
        raise AssertionError(f"Pallas SPP output does not match reference (max abs err {err})")

    print("KERNEL_OK")
</pallas_src>

<mosaic_0001>
module attributes {stable_mosaic.version = 11 : i64} {
  func.func @kernel(%arg0: i32, %arg1: memref<1x512xf32, #tpu.memory_space<vmem>>, %arg2: memref<1x4x512xbf16, #tpu.memory_space<vmem>>, %arg3: memref<2x4xbf16, #tpu.memory_space<vmem>>, %arg4: memref<2x1xf32, #tpu.memory_space<vmem>>, %arg5: memref<4x8x2xbf16, #tpu.memory_space<vmem>>, %arg6: memref<8x1xf32, #tpu.memory_space<vmem>>, %arg7: memref<1x8x512xf32, #tpu.memory_space<vmem>>, %arg8: memref<8x512xf32, #tpu.memory_space<vmem>>) attributes {dimension_semantics = [#tpu.dimension_semantics<parallel>], iteration_bounds = array<i64: 2>, scalar_prefetch = 0 : i64, scratch_operands = 1 : i64, tpu.core_type = #tpu.core_type<tc>, window_params = [{pipeline_mode = #tpu.pipeline_mode<synchronous>, transform_indices = @transform_0, window_bounds = array<i64: 1, 512>}, {transform_indices = @transform_1, window_bounds = array<i64: 1, 4, 512>}, {pipeline_mode = #tpu.pipeline_mode<synchronous>, transform_indices = @transform_2, window_bounds = array<i64: 2, 4>}, {pipeline_mode = #tpu.pipeline_mode<synchronous>, transform_indices = @transform_3, window_bounds = array<i64: 2, 1>}, {pipeline_mode = #tpu.pipeline_mode<synchronous>, transform_indices = @transform_4, window_bounds = array<i64: 4, 8, 2>}, {pipeline_mode = #tpu.pipeline_mode<synchronous>, transform_indices = @transform_5, window_bounds = array<i64: 8, 1>}, {transform_indices = @transform_6, window_bounds = array<i64: 1, 8, 512>}]} {
    %c0 = arith.constant 0 : index
    %c0_0 = arith.constant 0 : index
    %0 = vector.load %arg3[%c0, %c0_0] : memref<2x4xbf16, #tpu.memory_space<vmem>>, vector<2x4xbf16>
    %c0_1 = arith.constant 0 : index
    %c0_2 = arith.constant 0 : index
    %c0_3 = arith.constant 0 : index
    %1 = vector.load %arg2[%c0_1, %c0_2, %c0_3] : memref<1x4x512xbf16, #tpu.memory_space<vmem>>, vector<1x4x512xbf16>
    %2 = vector.shape_cast %1 : vector<1x4x512xbf16> to vector<4x512xbf16>
    %cst = arith.constant dense<0.000000e+00> : vector<2x512xf32>
    %3 = tpu.matmul %0, %2, %cst {dimension_numbers = #tpu.dot_dimension_numbers<[1], [0], [0], [1], [0, 0, 1, 1], [], []>} : vector<2x4xbf16>, vector<4x512xbf16>, vector<2x512xf32> -> vector<2x512xf32>
    %c0_4 = arith.constant 0 : index
    %c0_5 = arith.constant 0 : index
    %4 = vector.load %arg4[%c0_4, %c0_5] : memref<2x1xf32, #tpu.memory_space<vmem>>, vector<2x1xf32>
    %5 = vector.broadcast %4 : vector<2x1xf32> to vector<2x512xf32>
    %6 = arith.addf %3, %5 : vector<2x512xf32>
    %cst_6 = arith.constant 0.000000e+00 : f32
    %7 = vector.broadcast %cst_6 : f32 to vector<2x512xf32>
    %8 = arith.subf %7, %6 : vector<2x512xf32>
    %9 = math.exp %8 : vector<2x512xf32>
    %cst_7 = arith.constant 1.000000e+00 : f32
    %10 = vector.broadcast %cst_7 : f32 to vector<2x512xf32>
    %11 = arith.addf %10, %9 : vector<2x512xf32>
    %12 = tpu.reciprocal %11 {approx = true} : vector<2x512xf32> -> vector<2x512xf32>
    %13 = arith.mulf %6, %12 : vector<2x512xf32>
    %c0_8 = arith.constant 0 : index
    %c0_9 = arith.constant 0 : index
    %14 = vector.load %arg1[%c0_8, %c0_9] : memref<1x512xf32, #tpu.memory_space<vmem>>, vector<1x512xf32>
    %15 = vector.shape_cast %14 : vector<1x512xf32> to vector<1x512xf32>
    %16 = vector.broadcast %15 : vector<1x512xf32> to vector<2x512xf32>
    %17 = arith.addf %13, %16 : vector<2x512xf32>
    %c0_10 = arith.constant 0 : index
    %c0_11 = arith.constant 0 : index
    %c0_12 = arith.constant 0 : index
    %18 = vector.load %arg5[%c0_10, %c0_11, %c0_12] : memref<4x8x2xbf16, #tpu.memory_space<vmem>>, vector<1x8x2xbf16>
    %19 = vector.shape_cast %18 : vector<1x8x2xbf16> to vector<8x2xbf16>
    %20 = arith.truncf %17 : vector<2x512xf32> to vector<2x512xbf16>
    %cst_13 = arith.constant dense<0.000000e+00> : vector<8x512xf32>
    %21 = tpu.matmul %19, %20, %cst_13 {dimension_numbers = #tpu.dot_dimension_numbers<[1], [0], [0], [1], [0, 0, 1, 1], [], []>} : vector<8x2xbf16>, vector<2x512xbf16>, vector<8x512xf32> -> vector<8x512xf32>
    %c0_14 = arith.constant 0 : index
    %c0_15 = arith.constant 0 : index
    %22 = vector.load %arg8[%c0_14, %c0_15] : memref<8x512xf32, #tpu.memory_space<vmem>>, vector<8x512xf32>
    tpu.vector_store %arg8[%c0_14, %c0_15], %21 {strides = array<i32>} : memref<8x512xf32, #tpu.memory_space<vmem>>, vector<8x512xf32>,
    %c511_i32 = arith.constant 511 : i32
    %23 = tpu.dynamic_rotate %17 by %c511_i32 dim 1 : vector<2x512xf32>, i32 -> vector<2x512xf32>
    %24 = arith.maximumf %17, %23 : vector<2x512xf32>
    %c1_i32 = arith.constant 1 : i32
    %25 = tpu.dynamic_rotate %17 by %c1_i32 dim 1 : vector<2x512xf32>, i32 -> vector<2x512xf32>
    %26 = arith.maximumf %24, %25 : vector<2x512xf32>
    %c510_i32 = arith.constant 510 : i32
    %27 = tpu.dynamic_rotate %17 by %c510_i32 dim 1 : vector<2x512xf32>, i32 -> vector<2x512xf32>
    %28 = arith.maximumf %26, %27 : vector<2x512xf32>
    %c2_i32 = arith.constant 2 : i32
    %29 = tpu.dynamic_rotate %17 by %c2_i32 dim 1 : vector<2x512xf32>, i32 -> vector<2x512xf32>
    %30 = arith.maximumf %28, %29 : vector<2x512xf32>
    %c490_i32 = arith.constant 490 : i32
    %31 = tpu.dynamic_rotate %30 by %c490_i32 dim 1 : vector<2x512xf32>, i32 -> vector<2x512xf32>
    %32 = arith.maximumf %30, %31 : vector<2x512xf32>
    %c22_i32 = arith.constant 22 : i32
    %33 = tpu.dynamic_rotate %30 by %c22_i32 dim 1 : vector<2x512xf32>, i32 -> vector<2x512xf32>
    %34 = arith.maximumf %32, %33 : vector<2x512xf32>
    %c468_i32 = arith.constant 468 : i32
    %35 = tpu.dynamic_rotate %30 by %c468_i32 dim 1 : vector<2x512xf32>, i32 -> vector<2x512xf32>
    %36 = arith.maximumf %34, %35 : vector<2x512xf32>
    %c44_i32 = arith.constant 44 : i32
    %37 = tpu.dynamic_rotate %30 by %c44_i32 dim 1 : vector<2x512xf32>, i32 -> vector<2x512xf32>
    %38 = arith.maximumf %36, %37 : vector<2x512xf32>
    %c0_16 = arith.constant 0 : index
    %c0_17 = arith.constant 0 : index
    %39 = vector.load %arg8[%c0_16, %c0_17] : memref<8x512xf32, #tpu.memory_space<vmem>>, vector<8x512xf32>
    %c1 = arith.constant 1 : index
    %c0_18 = arith.constant 0 : index
    %c0_19 = arith.constant 0 : index
    %40 = vector.load %arg5[%c1, %c0_18, %c0_19] : memref<4x8x2xbf16, #tpu.memory_space<vmem>>, vector<1x8x2xbf16>
    %41 = vector.shape_cast %40 : vector<1x8x2xbf16> to vector<8x2xbf16>
    %42 = arith.truncf %38 : vector<2x512xf32> to vector<2x512xbf16>
    %cst_20 = arith.constant dense<0.000000e+00> : vector<8x512xf32>
    %43 = tpu.matmul %41, %42, %cst_20 {dimension_numbers = #tpu.dot_dimension_numbers<[1], [0], [0], [1], [0, 0, 1, 1], [], []>} : vector<8x2xbf16>, vector<2x512xbf16>, vector<8x512xf32> -> vector<8x512xf32>
    %44 = arith.addf %39, %43 : vector<8x512xf32>
    %c0_21 = arith.constant 0 : index
    %c0_22 = arith.constant 0 : index
    %45 = vector.load %arg8[%c0_21, %c0_22] : memref<8x512xf32, #tpu.memory_space<vmem>>, vector<8x512xf32>
    tpu.vector_store %arg8[%c0_21, %c0_22], %44 {strides = array<i32>} : memref<8x512xf32, #tpu.memory_space<vmem>>, vector<8x512xf32>,
    %c511_i32_23 = arith.constant 511 : i32
    %46 = tpu.dynamic_rotate %38 by %c511_i32_23 dim 1 : vector<2x512xf32>, i32 -> vector<2x512xf32>
    %47 = arith.maximumf %38, %46 : vector<2x512xf32>
    %c1_i32_24 = arith.constant 1 : i32
    %48 = tpu.dynamic_rotate %38 by %c1_i32_24 dim 1 : vector<2x512xf32>, i32 -> vector<2x512xf32>
    %49 = arith.maximumf %47, %48 : vector<2x512xf32>
    %c510_i32_25 = arith.constant 510 : i32
    %50 = tpu.dynamic_rotate %38 by %c510_i32_25 dim 1 : vector<2x512xf32>, i32 -> vector<2x512xf32>
    %51 = arith.maximumf %49, %50 : vector<2x512xf32>
    %c2_i32_26 = arith.constant 2 : i32
    %52 = tpu.dynamic_rotate %38 by %c2_i32_26 dim 1 : vector<2x512xf32>, i32 -> vector<2x512xf32>
    %53 = arith.maximumf %51, %52 : vector<2x512xf32>
    %c490_i32_27 = arith.constant 490 : i32
    %54 = tpu.dynamic_rotate %53 by %c490_i32_27 dim 1 : vector<2x512xf32>, i32 -> vector<2x512xf32>
    %55 = arith.maximumf %53, %54 : vector<2x512xf32>
    %c22_i32_28 = arith.constant 22 : i32
    %56 = tpu.dynamic_rotate %53 by %c22_i32_28 dim 1 : vector<2x512xf32>, i32 -> vector<2x512xf32>
    %57 = arith.maximumf %55, %56 : vector<2x512xf32>
    %c468_i32_29 = arith.constant 468 : i32
    %58 = tpu.dynamic_rotate %53 by %c468_i32_29 dim 1 : vector<2x512xf32>, i32 -> vector<2x512xf32>
    %59 = arith.maximumf %57, %58 : vector<2x512xf32>
    %c44_i32_30 = arith.constant 44 : i32
    %60 = tpu.dynamic_rotate %53 by %c44_i32_30 dim 1 : vector<2x512xf32>, i32 -> vector<2x512xf32>
    %61 = arith.maximumf %59, %60 : vector<2x512xf32>
    %c0_31 = arith.constant 0 : index
    %c0_32 = arith.constant 0 : index
    %62 = vector.load %arg8[%c0_31, %c0_32] : memref<8x512xf32, #tpu.memory_space<vmem>>, vector<8x512xf32>
    %c2 = arith.constant 2 : index
    %c0_33 = arith.constant 0 : index
    %c0_34 = arith.constant 0 : index
    %63 = vector.load %arg5[%c2, %c0_33, %c0_34] : memref<4x8x2xbf16, #tpu.memory_space<vmem>>, vector<1x8x2xbf16>
    %64 = vector.shape_cast %63 : vector<1x8x2xbf16> to vector<8x2xbf16>
    %65 = arith.truncf %61 : vector<2x512xf32> to vector<2x512xbf16>
    %cst_35 = arith.constant dense<0.000000e+00> : vector<8x512xf32>
    %66 = tpu.matmul %64, %65, %cst_35 {dimension_numbers = #tpu.dot_dimension_numbers<[1], [0], [0], [1], [0, 0, 1, 1], [], []>} : vector<8x2xbf16>, vector<2x512xbf16>, vector<8x512xf32> -> vector<8x512xf32>
    %67 = arith.addf %62, %66 : vector<8x512xf32>
    %c0_36 = arith.constant 0 : index
    %c0_37 = arith.constant 0 : index
    %68 = vector.load %arg8[%c0_36, %c0_37] : memref<8x512xf32, #tpu.memory_space<vmem>>, vector<8x512xf32>
    tpu.vector_store %arg8[%c0_36, %c0_37], %67 {strides = array<i32>} : memref<8x512xf32, #tpu.memory_space<vmem>>, vector<8x512xf32>,
    %c511_i32_38 = arith.constant 511 : i32
    %69 = tpu.dynamic_rotate %61 by %c511_i32_38 dim 1 : vector<2x512xf32>, i32 -> vector<2x512xf32>
    %70 = arith.maximumf %61, %69 : vector<2x512xf32>
    %c1_i32_39 = arith.constant 1 : i32
    %71 = tpu.dynamic_rotate %61 by %c1_i32_39 dim 1 : vector<2x512xf32>, i32 -> vector<2x512xf32>
    %72 = arith.maximumf %70, %71 : vector<2x512xf32>
    %c510_i32_40 = arith.constant 510 : i32
    %73 = tpu.dynamic_rotate %61 by %c510_i32_40 dim 1 : vector<2x512xf32>, i32 -> vector<2x512xf32>
    %74 = arith.maximumf %72, %73 : vector<2x512xf32>
    %c2_i32_41 = arith.constant 2 : i32
    %75 = tpu.dynamic_rotate %61 by %c2_i32_41 dim 1 : vector<2x512xf32>, i32 -> vector<2x512xf32>
    %76 = arith.maximumf %74, %75 : vector<2x512xf32>
    %c490_i32_42 = arith.constant 490 : i32
    %77 = tpu.dynamic_rotate %76 by %c490_i32_42 dim 1 : vector<2x512xf32>, i32 -> vector<2x512xf32>
    %78 = arith.maximumf %76, %77 : vector<2x512xf32>
    %c22_i32_43 = arith.constant 22 : i32
    %79 = tpu.dynamic_rotate %76 by %c22_i32_43 dim 1 : vector<2x512xf32>, i32 -> vector<2x512xf32>
    %80 = arith.maximumf %78, %79 : vector<2x512xf32>
    %c468_i32_44 = arith.constant 468 : i32
    %81 = tpu.dynamic_rotate %76 by %c468_i32_44 dim 1 : vector<2x512xf32>, i32 -> vector<2x512xf32>
    %82 = arith.maximumf %80, %81 : vector<2x512xf32>
    %c44_i32_45 = arith.constant 44 : i32
    %83 = tpu.dynamic_rotate %76 by %c44_i32_45 dim 1 : vector<2x512xf32>, i32 -> vector<2x512xf32>
    %84 = arith.maximumf %82, %83 : vector<2x512xf32>
    %c0_46 = arith.constant 0 : index
    %c0_47 = arith.constant 0 : index
    %85 = vector.load %arg8[%c0_46, %c0_47] : memref<8x512xf32, #tpu.memory_space<vmem>>, vector<8x512xf32>
    %c3 = arith.constant 3 : index
    %c0_48 = arith.constant 0 : index
    %c0_49 = arith.constant 0 : index
    %86 = vector.load %arg5[%c3, %c0_48, %c0_49] : memref<4x8x2xbf16, #tpu.memory_space<vmem>>, vector<1x8x2xbf16>
    %87 = vector.shape_cast %86 : vector<1x8x2xbf16> to vector<8x2xbf16>
    %88 = arith.truncf %84 : vector<2x512xf32> to vector<2x512xbf16>
    %cst_50 = arith.constant dense<0.000000e+00> : vector<8x512xf32>
    %89 = tpu.matmul %87, %88, %cst_50 {dimension_numbers = #tpu.dot_dimension_numbers<[1], [0], [0], [1], [0, 0, 1, 1], [], []>} : vector<8x2xbf16>, vector<2x512xbf16>, vector<8x512xf32> -> vector<8x512xf32>
    %90 = arith.addf %85, %89 : vector<8x512xf32>
    %c0_51 = arith.constant 0 : index
    %c0_52 = arith.constant 0 : index
    %91 = vector.load %arg8[%c0_51, %c0_52] : memref<8x512xf32, #tpu.memory_space<vmem>>, vector<8x512xf32>
    tpu.vector_store %arg8[%c0_51, %c0_52], %90 {strides = array<i32>} : memref<8x512xf32, #tpu.memory_space<vmem>>, vector<8x512xf32>,
    %c0_53 = arith.constant 0 : index
    %c0_54 = arith.constant 0 : index
    %92 = vector.load %arg8[%c0_53, %c0_54] : memref<8x512xf32, #tpu.memory_space<vmem>>, vector<8x512xf32>
    %c0_55 = arith.constant 0 : index
    %c0_56 = arith.constant 0 : index
    %93 = vector.load %arg6[%c0_55, %c0_56] : memref<8x1xf32, #tpu.memory_space<vmem>>, vector<8x1xf32>
    %94 = vector.broadcast %93 : vector<8x1xf32> to vector<8x512xf32>
    %95 = arith.addf %92, %94 : vector<8x512xf32>
    %cst_57 = arith.constant 0.000000e+00 : f32
    %96 = vector.broadcast %cst_57 : f32 to vector<8x512xf32>
    %97 = arith.subf %96, %95 : vector<8x512xf32>
    %98 = math.exp %97 : vector<8x512xf32>
    %cst_58 = arith.constant 1.000000e+00 : f32
    %99 = vector.broadcast %cst_58 : f32 to vector<8x512xf32>
    %100 = arith.addf %99, %98 : vector<8x512xf32>
    %101 = tpu.reciprocal %100 {approx = true} : vector<8x512xf32> -> vector<8x512xf32>
    %102 = arith.mulf %95, %101 : vector<8x512xf32>
    %c0_59 = arith.constant 0 : index
    %c0_60 = arith.constant 0 : index
    %c0_61 = arith.constant 0 : index
    %103 = vector.load %arg7[%c0_59, %c0_60, %c0_61] : memref<1x8x512xf32, #tpu.memory_space<vmem>>, vector<1x8x512xf32>
    %104 = vector.shape_cast %103 : vector<1x8x512xf32> to vector<8x512xf32>
    %105 = vector.shape_cast %102 : vector<8x512xf32> to vector<1x8x512xf32>
    tpu.vector_store %arg7[%c0_59, %c0_60, %c0_61], %105 {strides = array<i32>} : memref<1x8x512xf32, #tpu.memory_space<vmem>>, vector<1x8x512xf32>,
    return
  }
  func.func @transform_0(%arg0: i32) -> (i32, i32) {
    %c0_i32 = arith.constant 0 : i32
    %c0_i32_0 = arith.constant 0 : i32
    %c0_i32_1 = arith.constant 0 : i32
    return %c0_i32, %c0_i32_0 : i32, i32
  }
  func.func @transform_1(%arg0: i32) -> (i32, i32, i32) {
    %c0_i32 = arith.constant 0 : i32
    %c0_i32_0 = arith.constant 0 : i32
    %c0_i32_1 = arith.constant 0 : i32
    return %arg0, %c0_i32, %c0_i32_0 : i32, i32, i32
  }
  func.func @transform_2(%arg0: i32) -> (i32, i32) {
    %c0_i32 = arith.constant 0 : i32
    %c0_i32_0 = arith.constant 0 : i32
    %c0_i32_1 = arith.constant 0 : i32
    return %c0_i32, %c0_i32_0 : i32, i32
  }
  func.func @transform_3(%arg0: i32) -> (i32, i32) {
    %c0_i32 = arith.constant 0 : i32
    %c0_i32_0 = arith.constant 0 : i32
    %c0_i32_1 = arith.constant 0 : i32
    return %c0_i32, %c0_i32_0 : i32, i32
  }
  func.func @transform_4(%arg0: i32) -> (i32, i32, i32) {
    %c0_i32 = arith.constant 0 : i32
    %c0_i32_0 = arith.constant 0 : i32
    %c0_i32_1 = arith.constant 0 : i32
    %c0_i32_2 = arith.constant 0 : i32
    return %c0_i32, %c0_i32_0, %c0_i32_1 : i32, i32, i32
  }
  func.func @transform_5(%arg0: i32) -> (i32, i32) {
    %c0_i32 = arith.constant 0 : i32
    %c0_i32_0 = arith.constant 0 : i32
    %c0_i32_1 = arith.constant 0 : i32
    return %c0_i32, %c0_i32_0 : i32, i32
  }
  func.func @transform_6(%arg0: i32) -> (i32, i32, i32) {
    %c0_i32 = arith.constant 0 : i32
    %c0_i32_0 = arith.constant 0 : i32
    %c0_i32_1 = arith.constant 0 : i32
    return %arg0, %c0_i32, %c0_i32_0 : i32, i32, i32
  }
}

</mosaic_0001>

<bundles_post_ra>
// kernel: tpu_custom_call.1
= control target key start
LH: loop header
LB: loop body
LE: loop exit
PB: predicated region body
PF: predicated region fallthrough
CT: control target
= control target key end

     0   :  { %11 = vsyncpa [#allocation4], 0  ;;  %s2130_s0 = inlined_call_operand.vmem [shape: f32[1,512], index: 0, kind: input, shape index: {}]   ;;  %s2131_s1 = inlined_call_operand.vmem [shape: bf16[2,4,512], index: 1, kind: input, shape index: {}]   ;;  %s2132_s2 = inlined_call_operand.vmem [shape: bf16[2,4], index: 2, kind: input, shape index: {}]   ;;  %s2133_s3 = inlined_call_operand.vmem [shape: f32[2,1], index: 3, kind: input, shape index: {}]   ;;  %s2134_s4 = inlined_call_operand.vmem [shape: bf16[4,8,2], index: 4, kind: input, shape index: {}]   ;;  %s2135_s5 = inlined_call_operand.vmem [shape: f32[8,1], index: 5, kind: input, shape index: {}]   ;;  %s2136_s6 = inlined_call_operand.hbm [shape: f32[2,8,512], index: 6, kind: output, shape index: {}]  }
   0x1   :  { %13 = vsyncpa [#allocation4 + $0x1], 0  ;;  %s1665_s21 = smov 0   ;;  %s1667_s22 = smov 0  }
   0x2   :  { %s1669_s23 = smov 0   ;;  %s1671_s24 = smov 0  }
   0x3 LB: > { %s1686_s25 = sadd.s32 4294967295, %s1619_s24   ;;  %s1213_s26 = sadd.s32 4294967294, %s1619_s24   ;;  %s1619_s24 = sphi %s1671_s24, %s2142_s24   ;;  %s1615_s23 = sphi %s1669_s23, %s2141_s23   ;;  %s1611_s22 = sphi %s1667_s22, %s2140_s22   ;;  %s1607_s21 = sphi %s1665_s21, %s2139_s21  }
   0x4   : > { %s1690_s27 = sadd.s32 1, %s1619_s24   ;;  %s157_s28 = sadd.s32 1, %s1615_s23 }
   0x5   : > { %s154_s29 = ssub.s32 %s1619_s24, %s1690_s27  ;;  %p167_p0 = scmp.ne.s32.totalorder %s1615_s23, %s1611_s22 }
   0x6   : > { %p155_p1 = scmp.eq.s32.totalorder %s154_s29, 0  ;;  %p168_p2 = scmp.eq.s32.totalorder %s1686_s25, 1 }
   0x7   : > { %p173_p3 = scmp.ne.s32.totalorder %s1611_s22, %s1607_s21  ;;  %p174_p4 = scmp.eq.s32.totalorder %s1213_s26, 1 }
   0x8   : > { %s1701_s30 = scalar_select %p155_p1, %s1615_s23, %s157_s28  }
   0x9   : > { %p1703_p5 = por %p168_p2, %p167_p0  ;;  %p1707_p6 = por %p174_p4, %p173_p3 }
   0xa   : > { %p1216_p7 = scmp.ge.s32.totalorder %s1619_s24, 1  ;;  %p215_p8 = scmp.lt.s32.totalorder %s1619_s24, 3 }
   0xc   : > { %p216_p9 = pnand %p1216_p7, %p215_p8 }
   0xd   : > { %p245_p10 = scmp.lt.s32.totalorder (!%p216_p9), %s1686_s25, 1  ;;  %s1622_s20 = smov (!%p216_p9), 126  }
   0xe   : > { %219 = sbr.rel (%p216_p9) target bundleno = 1189 (0x4a5), region = 44  ;;  %s1623_s26 = smov (!%p216_p9), 1  }
   0xf   : > { %s1624_s28 = smov (!%p216_p9), 127   ;;  %s1625_s29 = smov (!%p216_p9), 2  }
  0x10   : > { %s1626_s9 = smov (!%p216_p9), 106   ;;  %s1627_s10 = smov (!%p216_p9), 22  }
  0x13   : > { %v1621_v0 = vmov 0   ;;  %v253_v1 = vld [vmem:[%s2133_s3] sm:$0x3]  ;;  %s246_s11 = scalar_select %p245_p10, %s1686_s25, 1  ;;  %vm269_vm0 = vcmask 1041408   ;;  %vm265_vm1 = vcmask 31744  }
  0x14   : > { %1298 = vset.pattern.permute.xlu0 %v1621_v0  ;;  %1524 = vset.pattern.permute.xlu1 %v1621_v0  ;;  %v251_v5 = vld [vmem:[%s2132_s2] sm:$0x1]  ;;  %vm377_vm2 = vcmask 1040384   ;;  %vm373_vm11 = vcmask 15360  }
  0x15   : > { %256 = vperm.xlu0 %1298, %v253_v1   ;;  %s1248_s12 = sshll.u32 %s246_s11, 3  ;;  %v354_v37 = vld [vmem:[%s2130_s0] sm:$0xf]  ;;  %s1628_s11 = smov 84  }
  0x16   : > { %s249_s15 = scalar_lea.vmem %s2131_s1, %s1248_s12  ;;  %v356_v40 = vperm.slane %v354_v37, 0  ;;  %v357_v43 = vperm.slane %v354_v37, 1  ;;  %v358_v50 = vperm.slane %v354_v37, 2  ;;  %v359_v55 = vperm.slane %v354_v37, 3  ;;  %s1629_s12 = smov 44  }
  0x17   : > { %v252_v2 = vld [vmem:[%s249_s15] sm:$0xff] }
  0x18   : > { %260 = vst [vmem:[#allocation1] ss:$4 sm:$0xff] %v252_v2 }
  0x1f   : > { %v261_v3 = vld.sshfl [vmem:[#allocation1] sm:$0xff pattern:$0x73625140]  ;;  %v262_v4 = vld.sshfl [vmem:[#allocation1 + $0x8] sm:$0xff pattern:$0x73625140] }
  0x20   : > { %v270_v6 = vsel %vm269_vm0, %v261_v3, 0  ;;  %v272_v7 = vsel %vm269_vm0, %v262_v4, 0  ;;  %v263_v8 = vld.sshfl [vmem:[#allocation1 + $0x10] sm:$0xff pattern:$0x73625140] }
  0x21   : > { %285 = vmatpush.bf16.msra.mxu0 %v270_v6  ;;  %298 = vmatpush.bf16.msra.mxu1 %v272_v7  ;;  %v274_v9 = vsel %vm269_vm0, %v263_v8, 0  ;;  %v264_v10 = vld.sshfl [vmem:[#allocation1 + $0x18] sm:$0xff pattern:$0x73625140] }
  0x22   : > { %311 = vmatpush.bf16.msra.mxu2 %v274_v9  ;;  %v276_v11 = vsel %vm269_vm0, %v264_v10, 0 }
  0x23   : > { %324 = vmatpush.bf16.msra.mxu3 %v276_v11 }
  0x24   : > { %1220 = vmatmul.msk.bf16.vlgmr.msra.gmra.mxu0 %vm265_vm1, %v251_v5  ;;  %1221 = vmatmul.msk.bf16.vlgmr.msra.gmra.mxu1 %vm265_vm1, %v251_v5 }
  0x25   : > { %1222 = vmatmul.msk.bf16.vlgmr.msra.gmra.mxu2 %vm265_vm1, %v251_v5 }
  0x26   : > { %1223 = vmatmul.msk.bf16.vlgmr.msra.gmra.mxu3 %vm265_vm1, %v251_v5  ;;  %v454_v5 = vlaneseq }
  0x28   : > { %v1749_v8 = vand.u32 127, %v454_v5 }
  0x2a   : > { %vm456_vm3 = vcmp.lt.s32.totalorder %v1749_v8, 127  ;;  %vm473_vm4 = vcmp.lt.s32.totalorder %v1749_v8, 1  ;;  %vm490_vm5 = vcmp.lt.s32.totalorder %v1749_v8, 126  ;;  %vm507_vm6 = vcmp.lt.s32.totalorder %v1749_v8, 2 }
  0x2b   : > { %vm524_vm7 = vcmp.lt.s32.totalorder %v1749_v8, 106  ;;  %vm541_vm8 = vcmp.lt.s32.totalorder %v1749_v8, 22  ;;  %vm558_vm9 = vcmp.lt.s32.totalorder %v1749_v8, 84  ;;  %vm575_vm10 = vcmp.lt.s32.totalorder %v1749_v8, 44 }
  0x87   : > { %v257_v12 = vpop.permute.xlu0 %256 }
  0xa1   : > { %v287_v13 = vpop.f32.mrf.mxu0  ;;  %v300_v14 = vpop.f32.mrf.mxu1 }
  0xa2   : > { %v288_v15 = vadd.f32 %v287_v13, %v257_v12  ;;  %v301_v16 = vadd.f32 %v300_v14, %v257_v12 }
  0xa4   : > { %v330_v17 = vsub.f32 0.0, %v288_v15  ;;  %v331_v18 = vsub.f32 0.0, %v301_v16 }
  0xa6   : > { %v334_v19 = vmul.f32 1.442695, %v330_v17  ;;  %v336_v20 = vmul.f32 1.442695, %v331_v18 }
  0xa8   : > { %1525 = vpow2.f32 %v334_v19  ;;  %v313_v21 = vpop.f32.mrf.mxu2 }
  0xa9   : > { %1527 = vpow2.f32 %v336_v20  ;;  %v314_v22 = vadd.f32 %v313_v21, %v257_v12  ;;  %v326_v23 = vpop.f32.mrf.mxu3  ;;  %v289_v24 = vpop.f32.mrf.mxu0 }
  0xaa   : > { %v327_v25 = vadd.f32 %v326_v23, %v257_v12  ;;  %v302_v26 = vpop.f32.mrf.mxu1 }
  0xab   : > { %v332_v27 = vsub.f32 0.0, %v314_v22 }
  0xac   : > { %v333_v28 = vsub.f32 0.0, %v327_v25 }
  0xad   : > { %v338_v29 = vmul.f32 1.442695, %v332_v27 }
  0xae   : > { %v1526_v30 = vpop.eup %1525  ;;  %v340_v31 = vmul.f32 1.442695, %v333_v28 }
  0xaf   : > { %v1528_v32 = vpop.eup %1527  ;;  %v342_v33 = vadd.f32 1.0, %v1526_v30  ;;  %1529 = vpow2.f32 %v338_v29 }
  0xb0   : > { %v343_v34 = vadd.f32 1.0, %v1528_v32  ;;  %1531 = vpow2.f32 %v340_v31  ;;  %v315_v35 = vpop.f32.mrf.mxu2 }
  0xb1   : > { %1533 = vrcp.f32 %v342_v33  ;;  %v328_v36 = vpop.f32.mrf.mxu3 }
  0xb2   : > { %1535 = vrcp.f32 %v343_v34 }
  0xb5   : > { %v1530_v38 = vpop.eup %1529 }
  0xb6   : > { %v1532_v39 = vpop.eup %1531  ;;  %v344_v41 = vadd.f32 1.0, %v1530_v38 }
  0xb7   : > { %v1534_v42 = vpop.eup %1533  ;;  %v345_v44 = vadd.f32 1.0, %v1532_v39 }
  0xb8   : > { %v1536_v45 = vpop.eup %1535  ;;  %v350_v46 = vmul.f32 %v1534_v42, %v288_v15  ;;  %1537 = vrcp.f32 %v344_v41 }
  0xb9   : > { %v351_v47 = vmul.f32 %v1536_v45, %v301_v16  ;;  %1539 = vrcp.f32 %v345_v44 }
  0xba   : > { %v1727_v48 = vadd.f32 %v356_v40, %v350_v46 }
  0xbb   : > { %v1729_v49 = vadd.f32 %v357_v43, %v351_v47 }
  0xbc   : > { %v369_v51 = vpack.c.bf16 %v1727_v48, %v1727_v48 }
  0xbd   : > { %v1309_v52 = vpack.i.bf16 %v1729_v49, %v1727_v48  ;;  %v370_v53 = vpack.c.bf16 %v1729_v49, %v1729_v49 }
  0xbe   : > { %v1538_v54 = vpop.eup %1537  ;;  %v379_v56 = vsel %vm377_vm2, %v369_v51, 0 }
  0xbf   : > { %v1540_v57 = vpop.eup %1539  ;;  %v352_v58 = vmul.f32 %v1538_v54, %v314_v22  ;;  %1310 = vrot.lane.b32.xlu2 %v1309_v52, %s1622_s20  ;;  %1305 = vrot.lane.b32.xlu1 %v1309_v52, %s1623_s26  ;;  %v382_v59 = vsel %vm377_vm2, %v370_v53, 0 }
  0xc0   : > { %v353_v60 = vmul.f32 %v1540_v57, %v327_v25  ;;  %1300 = vrot.lane.b32.xlu0 %v1309_v52, %s1624_s28  ;;  %397 = vmatpush.bf16.msrb.mxu0 %v379_v56 }
  0xc1   : > { %v366_v61 = vadd.f32 %v358_v50, %v352_v58  ;;  %410 = vmatpush.bf16.msrb.mxu1 %v382_v59 }
  0xc2   : > { %v367_v62 = vadd.f32 %v359_v55, %v353_v60 }
  0xc3   : > { %v371_v63 = vpack.c.bf16 %v366_v61, %v366_v61 }
  0xc4   : > { %v372_v0 = vpack.c.bf16 %v367_v62, %v367_v62  ;;  %v1319_v2 = vpack.i.bf16 %v367_v62, %v366_v61 }
  0xc5   : > { %v385_v1 = vsel %vm377_vm2, %v371_v63, 0 }
  0xc6   : > { %423 = vmatpush.bf16.msrb.mxu2 %v385_v1  ;;  %v388_v3 = vsel %vm377_vm2, %v372_v0, 0 }
  0xc7   : > { %436 = vmatpush.bf16.msrb.mxu3 %v388_v3  ;;  %1320 = vrot.lane.b32.xlu2 %v1319_v2, %s1623_s26 }
  0xc8   : > { %1315 = vrot.lane.b32.xlu1 %v1319_v2, %s1624_s28  ;;  %1325 = vrot.lane.b32.xlu0 %v1319_v2, %s1622_s20 }
  0xcf   : > { %1335 = vrot.lane.b32.xlu2 %v1319_v2, %s1625_s29 }
  0xd0   : > { %1330 = vrot.lane.b32.xlu1 %v1309_v52, %s1625_s29 }
 0x119   : > { %v1311_v4 = vpop.permute.xlu2 %1310 }
 0x11a   : > { %v1313_v21 = vunpack.i.h.bf16 %v1311_v4  ;;  %v1312_v22 = vunpack.i.l.bf16 %v1311_v4 }
 0x11c   : > { %v493_v44 = vsel %vm490_vm5, %v1312_v22, %v1313_v21 }
 0x121   : > { %v1321_v9 = vpop.permute.xlu2 %1320 }
 0x122   : > { %v1323_v13 = vunpack.i.h.bf16 %v1321_v9  ;;  %v1322_v14 = vunpack.i.l.bf16 %v1321_v9 }
 0x124   : > { %v474_v28 = vsel %vm473_vm4, %v1322_v14, %v1323_v13 }
 0x129   : > { %v1336_v29 = vpop.permute.xlu2 %1335 }
 0x12a   : > { %v1338_v41 = vunpack.i.h.bf16 %v1336_v29  ;;  %v1337_v42 = vunpack.i.l.bf16 %v1336_v29 }
 0x12c   : > { %v508_v54 = vsel %vm507_vm6, %v1337_v42, %v1338_v41 }
 0x131   : > { %v1306_v6 = vpop.permute.xlu1 %1305 }
 0x132   : > { %v1301_v7 = vpop.permute.xlu0 %1300  ;;  %v1308_v17 = vunpack.i.h.bf16 %v1306_v6  ;;  %v1307_v18 = vunpack.i.l.bf16 %v1306_v6 }
 0x133   : > { %v1303_v10 = vunpack.i.h.bf16 %v1301_v7  ;;  %v1302_v11 = vunpack.i.l.bf16 %v1301_v7 }
 0x134   : > { %v475_v33 = vsel %vm473_vm4, %v1308_v17, %v1322_v14  ;;  %v476_v34 = vsel %vm473_vm4, %v1307_v18, %v1308_v17  ;;  %v477_v35 = vsel %vm473_vm4, %v1323_v13, %v1307_v18 }
 0x135   : > { %v459_v12 = vsel %vm456_vm3, %v1302_v11, %v1303_v10 }
 0x136   : > { %v461_v23 = vmax.f32 %v1727_v48, %v459_v12 }
 0x138   : > { %v478_v37 = vmax.f32 %v461_v23, %v477_v35 }
 0x13a   : > { %v1316_v15 = vpop.permute.xlu1 %1315  ;;  %v1326_v16 = vpop.permute.xlu0 %1325  ;;  %v495_v53 = vmax.f32 %v478_v37, %v493_v44 }
 0x13b   : > { %v1318_v19 = vunpack.i.h.bf16 %v1316_v15  ;;  %v1317_v20 = vunpack.i.l.bf16 %v1316_v15  ;;  %v1328_v27 = vunpack.i.h.bf16 %v1326_v16  ;;  %v1327_v36 = vunpack.i.l.bf16 %v1326_v16 }
 0x13d   : > { %v457_v24 = vsel %vm456_vm3, %v1317_v20, %v1318_v19  ;;  %v458_v25 = vsel %vm456_vm3, %v1303_v10, %v1317_v20  ;;  %v460_v26 = vsel %vm456_vm3, %v1318_v19, %v1302_v11  ;;  %v494_v43 = vsel %vm490_vm5, %v1328_v27, %v1312_v22 }
 0x13e   : > { %v462_v30 = vmax.f32 %v1729_v49, %v458_v25  ;;  %v463_v31 = vmax.f32 %v366_v61, %v457_v24  ;;  %v464_v32 = vmax.f32 %v367_v62, %v460_v26  ;;  %v491_v47 = vsel %vm490_vm5, %v1327_v36, %v1328_v27 }
 0x13f   : > { %v492_v48 = vsel %vm490_vm5, %v1313_v21, %v1327_v36 }
 0x140   : > { %v480_v38 = vmax.f32 %v463_v31, %v475_v33  ;;  %v479_v39 = vmax.f32 %v462_v30, %v476_v34  ;;  %v481_v40 = vmax.f32 %v464_v32, %v474_v28 }
 0x142   : > { %v498_v45 = vmax.f32 %v481_v40, %v494_v43  ;;  %v1331_v46 = vpop.permute.xlu1 %1330  ;;  %v496_v51 = vmax.f32 %v479_v39, %v492_v48  ;;  %v497_v52 = vmax.f32 %v480_v38, %v491_v47 }
 0x143   : > { %v1333_v49 = vunpack.i.h.bf16 %v1331_v46  ;;  %v1332_v50 = vunpack.i.l.bf16 %v1331_v46 }
 0x144   : > { %v515_v58 = vmax.f32 %v498_v45, %v508_v54 }
 0x145   : > { %v509_v55 = vsel %vm507_vm6, %v1333_v49, %v1337_v42  ;;  %v510_v56 = vsel %vm507_vm6, %v1332_v50, %v1333_v49  ;;  %v511_v57 = vsel %vm507_vm6, %v1338_v41, %v1332_v50 }
 0x146   : > { %v512_v59 = vmax.f32 %v495_v53, %v511_v57  ;;  %v513_v60 = vmax.f32 %v496_v51, %v510_v56  ;;  %v514_v61 = vmax.f32 %v497_v52, %v509_v55 }
 0x148   : > { %v1344_v62 = vpack.i.bf16 %v515_v58, %v514_v61  ;;  %v1349_v63 = vpack.i.bf16 %v513_v60, %v512_v59 }
 0x14a   : > { %1345 = vrot.lane.b32.xlu1 %v1344_v62, %s1626_s9  ;;  %1350 = vrot.lane.b32.xlu2 %v1349_v63, %s1627_s10 }
 0x14b   : > { %1340 = vrot.lane.b32.xlu0 %v1349_v63, %s1626_s9 }
 0x152   : > { %1360 = vrot.lane.b32.xlu1 %v1349_v63, %s1628_s11  ;;  %1365 = vrot.lane.b32.xlu2 %v1344_v62, %s1628_s11 }
 0x153   : > { %1355 = vrot.lane.b32.xlu0 %v1344_v62, %s1627_s10 }
 0x15a   : > { %1375 = vrot.lane.b32.xlu1 %v1344_v62, %s1629_s12 }
 0x15b   : > { %1370 = vrot.lane.b32.xlu0 %v1349_v63, %s1629_s12 }
 0x1a4   : > { %v1351_v0 = vpop.permute.xlu2 %1350 }
 0x1a5   : > { %v1353_v11 = vunpack.i.h.bf16 %v1351_v0  ;;  %v1352_v12 = vunpack.i.l.bf16 %v1351_v0 }
 0x1a7   : > { %v544_v33 = vsel %vm541_vm8, %v1352_v12, %v1353_v11 }
 0x1ac   : > { %v1366_v7 = vpop.permute.xlu2 %1365 }
 0x1ad   : > { %v1368_v19 = vunpack.i.h.bf16 %v1366_v7  ;;  %v1367_v20 = vunpack.i.l.bf16 %v1366_v7 }
 0x1af   : > { %v559_v34 = vsel %vm558_vm9, %v1367_v20, %v1368_v19 }
 0x1bc   : > { %v1346_v1 = vpop.permute.xlu1 %1345 }
 0x1bd   : > { %v1341_v2 = vpop.permute.xlu0 %1340  ;;  %v1348_v3 = vunpack.i.h.bf16 %v1346_v1  ;;  %v1347_v5 = vunpack.i.l.bf16 %v1346_v1 }
 0x1be   : > { %v1342_v4 = vunpack.i.l.bf16 %v1341_v2  ;;  %v1343_v6 = vunpack.i.h.bf16 %v1341_v2 }
 0x1bf   : > { %v525_v13 = vsel %vm524_vm7, %v1347_v5, %v1348_v3 }
 0x1c0   : > { %v528_v9 = vsel %vm524_vm7, %v1348_v3, %v1342_v4  ;;  %v526_v15 = vsel %vm524_vm7, %v1343_v6, %v1347_v5  ;;  %v527_v16 = vsel %vm524_vm7, %v1342_v4, %v1343_v6  ;;  %v531_v26 = vmax.f32 %v514_v61, %v525_v13 }
 0x1c1   : > { %v532_v21 = vmax.f32 %v515_v58, %v528_v9  ;;  %v530_v27 = vmax.f32 %v513_v60, %v526_v15  ;;  %v529_v28 = vmax.f32 %v512_v59, %v527_v16 }
 0x1c3   : > { %v547_v37 = vmax.f32 %v530_v27, %v544_v33 }
 0x1c4   : > { %v1361_v10 = vpop.permute.xlu1 %1360 }
 0x1c5   : > { %v1356_v14 = vpop.permute.xlu0 %1355  ;;  %v1363_v22 = vunpack.i.h.bf16 %v1361_v10  ;;  %v1362_v29 = vunpack.i.l.bf16 %v1361_v10 }
 0x1c6   : > { %v1358_v17 = vunpack.i.h.bf16 %v1356_v14  ;;  %v1357_v18 = vunpack.i.l.bf16 %v1356_v14 }
 0x1c7   : > { %v560_v35 = vsel %vm558_vm9, %v1363_v22, %v1367_v20  ;;  %v562_v38 = vsel %vm558_vm9, %v1368_v19, %v1362_v29  ;;  %v561_v42 = vsel %vm558_vm9, %v1362_v29, %v1363_v22 }
 0x1c8   : > { %v545_v23 = vsel %vm541_vm8, %v1358_v17, %v1352_v12  ;;  %v542_v24 = vsel %vm541_vm8, %v1357_v18, %v1358_v17  ;;  %v543_v25 = vsel %vm541_vm8, %v1353_v11, %v1357_v18  ;;  %v564_v46 = vmax.f32 %v547_v37, %v560_v35 }
 0x1c9   : > { %v549_v30 = vmax.f32 %v532_v21, %v542_v24  ;;  %v546_v31 = vmax.f32 %v529_v28, %v545_v23  ;;  %v548_v32 = vmax.f32 %v531_v26, %v543_v25 }
 0x1cb   : > { %v566_v43 = vmax.f32 %v549_v30, %v562_v38  ;;  %v563_v48 = vmax.f32 %v546_v31, %v561_v42  ;;  %v565_v49 = vmax.f32 %v548_v32, %v559_v34 }
 0x1cc   : > { %v1376_v36 = vpop.permute.xlu1 %1375 }
 0x1cd   : > { %v1378_v39 = vunpack.i.h.bf16 %v1376_v36  ;;  %v1377_v40 = vunpack.i.l.bf16 %v1376_v36  ;;  %v1371_v41 = vpop.permute.xlu0 %1370 }
 0x1ce   : > { %v1373_v44 = vunpack.i.h.bf16 %v1371_v41  ;;  %v1372_v45 = vunpack.i.l.bf16 %v1371_v41 }
 0x1cf   : > { %v576_v47 = vsel %vm575_vm10, %v1377_v40, %v1378_v39 }
 0x1d0   : > { %v1827_v50 = vmax.f32 %v566_v43, %v576_v47  ;;  %v577_v51 = vsel %vm575_vm10, %v1373_v44, %v1377_v40  ;;  %v578_v52 = vsel %vm575_vm10, %v1372_v45, %v1373_v44  ;;  %v579_v53 = vsel %vm575_vm10, %v1378_v39, %v1372_v45 }
 0x1d1   : > { %v1835_v54 = vmax.f32 %v563_v48, %v579_v53  ;;  %v581_v55 = vmax.f32 %v564_v46, %v578_v52  ;;  %v1837_v56 = vmax.f32 %v565_v49, %v577_v51 }
 0x1d2   : > { %v593_v57 = vpack.c.bf16 %v1827_v50, %v1827_v50 }
 0x1d3   : > { %v1384_v58 = vpack.i.bf16 %v1827_v50, %v1837_v56  ;;  %v1389_v59 = vpack.i.bf16 %v581_v55, %v1835_v54  ;;  %v590_v60 = vpack.c.bf16 %v1835_v54, %v1835_v54  ;;  %v591_v61 = vpack.c.bf16 %v581_v55, %v581_v55 }
 0x1d4   : > { %v592_v62 = vpack.c.bf16 %v1837_v56, %v1837_v56  ;;  %v607_v0 = vsel %vm377_vm2, %v593_v57, 0 }
 0x1d5   : > { %1385 = vrot.lane.b32.xlu0 %v1384_v58, %s1624_s28  ;;  %1390 = vrot.lane.b32.xlu1 %v1389_v59, %s1623_s26  ;;  %v598_v63 = vsel %vm377_vm2, %v590_v60, 0  ;;  %v601_v1 = vsel %vm377_vm2, %v591_v61, 0 }
 0x1d6   : > { %1380 = vrot.lane.b32.xlu2 %v1389_v59, %s1624_s28  ;;  %616 = vmatpush.bf16.msra.mxu0 %v598_v63  ;;  %v604_v2 = vsel %vm377_vm2, %v592_v62, 0  ;;  %v368_v63 = vld [vmem:[%s2134_s4] sm:$0xf] }
 0x1d7   : > { %629 = vmatpush.bf16.msra.mxu1 %v601_v1  ;;  %642 = vmatpush.bf16.msra.mxu2 %v604_v2 }
 0x1d8   : > { %655 = vmatpush.bf16.msra.mxu3 %v607_v0  ;;  %1224 = vmatmul.msk.bf16.vlgmr.msrb.gmra.mxu0 %vm373_vm11, %v368_v63 }
 0x1d9   : > { %1227 = vmatmul.msk.bf16.vlgmr.msrb.gmra.mxu3 %vm373_vm11, %v368_v63  ;;  %1225 = vmatmul.msk.bf16.vlgmr.msrb.gmra.mxu1 %vm373_vm11, %v368_v63 }
 0x1da   : > { %1226 = vmatmul.msk.bf16.vlgmr.msrb.gmra.mxu2 %vm373_vm11, %v368_v63 }
 0x1dd   : > { %1400 = vrot.lane.b32.xlu0 %v1389_v59, %s1622_s20  ;;  %1405 = vrot.lane.b32.xlu1 %v1384_v58, %s1622_s20 }
 0x1de   : > { %1395 = vrot.lane.b32.xlu2 %v1384_v58, %s1623_s26 }
 0x1e5   : > { %1415 = vrot.lane.b32.xlu0 %v1384_v58, %s1625_s29 }
 0x1e6   : > { %1410 = vrot.lane.b32.xlu2 %v1389_v59, %s1625_s29 }
 0x230   : > { %v1381_v3 = vpop.permute.xlu2 %1380 }
 0x231   : > { %v1383_v9 = vunpack.i.h.bf16 %v1381_v3  ;;  %v1382_v11 = vunpack.i.l.bf16 %v1381_v3 }
 0x233   : > { %v679_v21 = vsel %vm456_vm3, %v1382_v11, %v1383_v9 }
 0x234   : > { %v681_v30 = vmax.f32 %v1835_v54, %v679_v21 }
 0x238   : > { %v1396_v6 = vpop.permute.xlu2 %1395 }
 0x239   : > { %v1398_v22 = vunpack.i.h.bf16 %v1396_v6  ;;  %v1397_v23 = vunpack.i.l.bf16 %v1396_v6 }
 0x23b   : > { %v693_v34 = vsel %vm473_vm4, %v1397_v23, %v1398_v22 }
 0x240   : > { %v1411_v25 = vpop.permute.xlu2 %1410 }
 0x241   : > { %v1413_v35 = vunpack.i.h.bf16 %v1411_v25  ;;  %v1412_v36 = vunpack.i.l.bf16 %v1411_v25 }
 0x243   : > { %v727_v52 = vsel %vm507_vm6, %v1412_v36, %v1413_v35 }
 0x247   : > { %v1386_v4 = vpop.permute.xlu0 %1385  ;;  %v1391_v5 = vpop.permute.xlu1 %1390 }
 0x248   : > { %v1387_v7 = vunpack.i.l.bf16 %v1386_v4  ;;  %v1388_v10 = vunpack.i.h.bf16 %v1386_v4  ;;  %v1393_v13 = vunpack.i.h.bf16 %v1391_v5  ;;  %v1392_v14 = vunpack.i.l.bf16 %v1391_v5 }
 0x24a   : > { %v678_v12 = vsel %vm456_vm3, %v1383_v9, %v1387_v7  ;;  %v677_v17 = vsel %vm456_vm3, %v1387_v7, %v1388_v10  ;;  %v680_v18 = vsel %vm456_vm3, %v1388_v10, %v1382_v11  ;;  %v695_v31 = vsel %vm473_vm4, %v1392_v14, %v1393_v13 }
 0x24b   : > { %v682_v24 = vmax.f32 %v581_v55, %v678_v12  ;;  %v683_v28 = vmax.f32 %v1837_v56, %v677_v17  ;;  %v684_v29 = vmax.f32 %v1827_v50, %v680_v18  ;;  %v696_v32 = vsel %vm473_vm4, %v1398_v22, %v1392_v14 }
 0x24c   : > { %v694_v38 = vsel %vm473_vm4, %v1393_v13, %v1397_v23  ;;  %v697_v42 = vmax.f32 %v681_v30, %v696_v32 }
 0x24d   : > { %v698_v37 = vmax.f32 %v682_v24, %v695_v31  ;;  %v699_v43 = vmax.f32 %v683_v28, %v694_v38  ;;  %v700_v44 = vmax.f32 %v684_v29, %v693_v34 }
 0x24f   : > { %v1401_v15 = vpop.permute.xlu0 %1400  ;;  %v1406_v16 = vpop.permute.xlu1 %1405 }
 0x250   : > { %v1403_v19 = vunpack.i.h.bf16 %v1401_v15  ;;  %v1407_v20 = vunpack.i.l.bf16 %v1406_v16  ;;  %v1402_v26 = vunpack.i.l.bf16 %v1401_v15  ;;  %v1408_v27 = vunpack.i.h.bf16 %v1406_v16 }
 0x252   : > { %v710_v33 = vsel %vm490_vm5, %v1403_v19, %v1407_v20  ;;  %v711_v39 = vsel %vm490_vm5, %v1402_v26, %v1403_v19  ;;  %v712_v40 = vsel %vm490_vm5, %v1408_v27, %v1402_v26  ;;  %v709_v41 = vsel %vm490_vm5, %v1407_v20, %v1408_v27 }
 0x253   : > { %v714_v45 = vmax.f32 %v698_v37, %v710_v33  ;;  %v713_v49 = vmax.f32 %v697_v42, %v711_v39  ;;  %v715_v50 = vmax.f32 %v699_v43, %v709_v41  ;;  %v716_v51 = vmax.f32 %v700_v44, %v712_v40 }
 0x255   : > { %v730_v56 = vmax.f32 %v714_v45, %v727_v52 }
 0x257   : > { %v1416_v46 = vpop.permute.xlu0 %1415 }
 0x258   : > { %v1418_v47 = vunpack.i.h.bf16 %v1416_v46  ;;  %v1417_v48 = vunpack.i.l.bf16 %v1416_v46 }
 0x25a   : > { %v725_v53 = vsel %vm507_vm6, %v1417_v48, %v1418_v47  ;;  %v726_v54 = vsel %vm507_vm6, %v1413_v35, %v1417_v48  ;;  %v728_v55 = vsel %vm507_vm6, %v1418_v47, %v1412_v36 }
 0x25b   : > { %v729_v57 = vmax.f32 %v713_v49, %v728_v55  ;;  %v731_v58 = vmax.f32 %v715_v50, %v726_v54  ;;  %v732_v59 = vmax.f32 %v716_v51, %v725_v53 }
 0x25d   : > { %v1424_v60 = vpack.i.bf16 %v732_v59, %v731_v58  ;;  %v1429_v61 = vpack.i.bf16 %v730_v56, %v729_v57 }
 0x25f   : > { %1425 = vrot.lane.b32.xlu2 %v1424_v60, %s1626_s9  ;;  %1430 = vrot.lane.b32.xlu0 %v1429_v61, %s1627_s10 }
 0x260   : > { %1420 = vrot.lane.b32.xlu1 %v1429_v61, %s1626_s9 }
 0x267   : > { %1440 = vrot.lane.b32.xlu2 %v1429_v61, %s1628_s11  ;;  %1445 = vrot.lane.b32.xlu0 %v1424_v60, %s1628_s11 }
 0x268   : > { %1435 = vrot.lane.b32.xlu1 %v1424_v60, %s1627_s10 }
 0x26f   : > { %1455 = vrot.lane.b32.xlu2 %v1424_v60, %s1629_s12 }
 0x270   : > { %1450 = vrot.lane.b32.xlu1 %v1429_v61, %s1629_s12 }
 0x2b9   : > { %v1426_v62 = vpop.permute.xlu2 %1425 }
 0x2ba   : > { %v1428_v4 = vunpack.i.h.bf16 %v1426_v62  ;;  %v1427_v5 = vunpack.i.l.bf16 %v1426_v62 }
 0x2bc   : > { %v741_v11 = vsel %vm524_vm7, %v1427_v5, %v1428_v4 }
 0x2bd   : > { %v747_v28 = vmax.f32 %v731_v58, %v741_v11 }
 0x2c1   : > { %v1441_v0 = vpop.permute.xlu2 %1440 }
 0x2c2   : > { %v1442_v20 = vunpack.i.l.bf16 %v1441_v0  ;;  %v1443_v32 = vunpack.i.h.bf16 %v1441_v0 }
 0x2c4   : > { %v775_v43 = vsel %vm558_vm9, %v1442_v20, %v1443_v32 }
 0x2c9   : > { %v1456_v7 = vpop.permute.xlu2 %1455 }
 0x2ca   : > { %v1458_v21 = vunpack.i.h.bf16 %v1456_v7  ;;  %v1457_v22 = vunpack.i.l.bf16 %v1456_v7 }
 0x2cc   : > { %v789_v37 = vsel %vm575_vm10, %v1457_v22, %v1458_v21 }
 0x2d1   : > { %v1431_v1 = vpop.permute.xlu0 %1430 }
 0x2d2   : > { %v1421_v2 = vpop.permute.xlu1 %1420  ;;  %v1433_v12 = vunpack.i.h.bf16 %v1431_v1  ;;  %v1432_v13 = vunpack.i.l.bf16 %v1431_v1 }
 0x2d3   : > { %v1422_v3 = vunpack.i.l.bf16 %v1421_v2  ;;  %v1423_v6 = vunpack.i.h.bf16 %v1421_v2 }
 0x2d4   : > { %v759_v38 = vsel %vm541_vm8, %v1432_v13, %v1433_v12 }
 0x2d5   : > { %v744_v9 = vsel %vm524_vm7, %v1428_v4, %v1422_v3  ;;  %v742_v14 = vsel %vm524_vm7, %v1423_v6, %v1427_v5  ;;  %v743_v16 = vsel %vm524_vm7, %v1422_v3, %v1423_v6 }
 0x2d6   : > { %v748_v23 = vmax.f32 %v732_v59, %v744_v9  ;;  %v746_v29 = vmax.f32 %v730_v56, %v742_v14  ;;  %v745_v30 = vmax.f32 %v729_v57, %v743_v16 }
 0x2d8   : > { %v762_v40 = vmax.f32 %v746_v29, %v759_v38 }
 0x2d9   : > { %v1446_v10 = vpop.permute.xlu0 %1445 }
 0x2da   : > { %v1436_v15 = vpop.permute.xlu1 %1435  ;;  %v1448_v17 = vunpack.i.h.bf16 %v1446_v10  ;;  %v1447_v24 = vunpack.i.l.bf16 %v1446_v10 }
 0x2db   : > { %v1438_v18 = vunpack.i.h.bf16 %v1436_v15  ;;  %v1437_v19 = vunpack.i.l.bf16 %v1436_v15 }
 0x2dc   : > { %v776_v33 = vsel %vm558_vm9, %v1448_v17, %v1442_v20  ;;  %v774_v39 = vsel %vm558_vm9, %v1443_v32, %v1447_v24  ;;  %v773_v44 = vsel %vm558_vm9, %v1447_v24, %v1448_v17 }
 0x2dd   : > { %v760_v25 = vsel %vm541_vm8, %v1438_v18, %v1432_v13  ;;  %v757_v26 = vsel %vm541_vm8, %v1437_v19, %v1438_v18  ;;  %v758_v27 = vsel %vm541_vm8, %v1433_v12, %v1437_v19  ;;  %v778_v47 = vmax.f32 %v762_v40, %v774_v39 }
 0x2de   : > { %v764_v31 = vmax.f32 %v748_v23, %v757_v26  ;;  %v761_v34 = vmax.f32 %v745_v30, %v760_v25  ;;  %v763_v35 = vmax.f32 %v747_v28, %v758_v27 }
 0x2e0   : > { %v780_v36 = vmax.f32 %v764_v31, %v776_v33  ;;  %v777_v48 = vmax.f32 %v761_v34, %v775_v43  ;;  %v779_v49 = vmax.f32 %v763_v35, %v773_v44 }
 0x2e2   : > { %v1932_v41 = vmax.f32 %v780_v36, %v789_v37  ;;  %v1451_v42 = vpop.permute.xlu1 %1450 }
 0x2e3   : > { %v1453_v45 = vunpack.i.h.bf16 %v1451_v42  ;;  %v1452_v46 = vunpack.i.l.bf16 %v1451_v42 }
 0x2e4   : > { %v806_v50 = vpack.c.bf16 %v1932_v41, %v1932_v41 }
 0x2e5   : > { %v790_v51 = vsel %vm575_vm10, %v1453_v45, %v1457_v22  ;;  %v791_v52 = vsel %vm575_vm10, %v1452_v46, %v1453_v45  ;;  %v792_v53 = vsel %vm575_vm10, %v1458_v21, %v1452_v46 }
 0x2e6   : > { %v793_v54 = vmax.f32 %v777_v48, %v792_v53  ;;  %v794_v55 = vmax.f32 %v778_v47, %v791_v52  ;;  %v795_v56 = vmax.f32 %v779_v49, %v790_v51  ;;  %v820_v57 = vsel %vm377_vm2, %v806_v50, 0 }
 0x2e7   : > { %868 = vmatpush.bf16.msrb.mxu3 %v820_v57 }
 0x2e8   : > { %v1464_v58 = vpack.i.bf16 %v1932_v41, %v795_v56  ;;  %v1469_v59 = vpack.i.bf16 %v794_v55, %v793_v54  ;;  %v803_v60 = vpack.c.bf16 %v793_v54, %v793_v54  ;;  %v804_v61 = vpack.c.bf16 %v794_v55, %v794_v55 }
 0x2e9   : > { %v805_v62 = vpack.c.bf16 %v795_v56, %v795_v56 }
 0x2ea   : > { %1465 = vrot.lane.b32.xlu1 %v1464_v58, %s1624_s28  ;;  %1470 = vrot.lane.b32.xlu2 %v1469_v59, %s1623_s26  ;;  %v811_v63 = vsel %vm377_vm2, %v803_v60, 0  ;;  %v814_v0 = vsel %vm377_vm2, %v804_v61, 0 }
 0x2eb   : > { %1460 = vrot.lane.b32.xlu0 %v1469_v59, %s1624_s28  ;;  %829 = vmatpush.bf16.msrb.mxu0 %v811_v63  ;;  %v817_v1 = vsel %vm377_vm2, %v805_v62, 0  ;;  %v1228_v62 = vld [vmem:[%s2134_s4 + $0x4] sm:$0xf]  ;;  %v1233_v63 = vld [vmem:[%s2134_s4 + $0x8] sm:$0xf] }
 0x2ec   : > { %842 = vmatpush.bf16.msrb.mxu1 %v814_v0  ;;  %855 = vmatpush.bf16.msrb.mxu2 %v817_v1 }
 0x2ed   : > { %1231 = vmatmul.msk.bf16.vlgmr.msra.gmra.mxu2 %vm373_vm11, %v1228_v62  ;;  %1232 = vmatmul.msk.bf16.vlgmr.msra.gmra.mxu3 %vm373_vm11, %v1228_v62 }
 0x2ee   : > { %1229 = vmatmul.msk.bf16.vlgmr.msra.gmra.mxu0 %vm373_vm11, %v1228_v62  ;;  %1230 = vmatmul.msk.bf16.vlgmr.msra.gmra.mxu1 %vm373_vm11, %v1228_v62 }
 0x2f2   : > { %1480 = vrot.lane.b32.xlu1 %v1469_v59, %s1622_s20  ;;  %1485 = vrot.lane.b32.xlu2 %v1464_v58, %s1622_s20 }
 0x2f3   : > { %1475 = vrot.lane.b32.xlu0 %v1464_v58, %s1623_s26  ;;  %s1577_s26 = scalar_lea.hbm %s2136_s6, 64 }
 0x2fa   : > { %1495 = vrot.lane.b32.xlu1 %v1464_v58, %s1625_s29 }
 0x2fb   : > { %1490 = vrot.lane.b32.xlu0 %v1469_v59, %s1625_s29  ;;  %s242_s29 = sand.u32 1, %s1611_s22  }
 0x2fd   : > { %1236 = vmatmul.msk.bf16.vlgmr.msrb.gmra.mxu2 %vm373_vm11, %v1233_v63  ;;  %1237 = vmatmul.msk.bf16.vlgmr.msrb.gmra.mxu3 %vm373_vm11, %v1233_v63 }
 0x2fe   : > { %1234 = vmatmul.msk.bf16.vlgmr.msrb.gmra.mxu0 %vm373_vm11, %v1233_v63  ;;  %1235 = vmatmul.msk.bf16.vlgmr.msrb.gmra.mxu1 %vm373_vm11, %v1233_v63 }
 0x344   : > { %v1471_v2 = vpop.permute.xlu2 %1470 }
 0x345   : > { %v1473_v13 = vunpack.i.h.bf16 %v1471_v2  ;;  %v1472_v14 = vunpack.i.l.bf16 %v1471_v2 }
 0x347   : > { %v908_v35 = vsel %vm473_vm4, %v1472_v14, %v1473_v13 }
 0x34c   : > { %v1486_v10 = vpop.permute.xlu2 %1485 }
 0x34d   : > { %v1488_v21 = vunpack.i.h.bf16 %v1486_v10  ;;  %v1487_v22 = vunpack.i.l.bf16 %v1486_v10 }
 0x34f   : > { %v922_v36 = vsel %vm490_vm5, %v1487_v22, %v1488_v21 }
 0x35c   : > { %v1466_v3 = vpop.permute.xlu1 %1465 }
 0x35d   : > { %v1461_v4 = vpop.permute.xlu0 %1460  ;;  %v1468_v5 = vunpack.i.h.bf16 %v1466_v3  ;;  %v1467_v7 = vunpack.i.l.bf16 %v1466_v3 }
 0x35e   : > { %v1462_v6 = vunpack.i.l.bf16 %v1461_v4  ;;  %v1463_v9 = vunpack.i.h.bf16 %v1461_v4 }
 0x35f   : > { %v890_v15 = vsel %vm456_vm3, %v1467_v7, %v1468_v5 }
 0x360   : > { %v893_v11 = vsel %vm456_vm3, %v1468_v5, %v1462_v6  ;;  %v891_v17 = vsel %vm456_vm3, %v1463_v9, %v1467_v7  ;;  %v892_v18 = vsel %vm456_vm3, %v1462_v6, %v1463_v9  ;;  %v896_v28 = vmax.f32 %v795_v56, %v890_v15  ;;  %v1099_v6 = vld [vmem:[%s2135_s5] sm:$0xff]  ;;  %v2036_v7 = vpop.f32.mrf.mxu0  ;;  %v2038_v9 = vpop.f32.mrf.mxu1 }
 0x361   : > { %v897_v23 = vmax.f32 %v1932_v41, %v893_v11  ;;  %v895_v29 = vmax.f32 %v794_v55, %v891_v17  ;;  %v894_v30 = vmax.f32 %v793_v54, %v892_v18  ;;  %v2042_v11 = vpop.f32.mrf.mxu2 }
 0x363   : > { %v911_v39 = vmax.f32 %v895_v29, %v908_v35 }
 0x364   : > { %v1481_v12 = vpop.permute.xlu1 %1480 }
 0x365   : > { %v1476_v16 = vpop.permute.xlu0 %1475  ;;  %v1483_v24 = vunpack.i.h.bf16 %v1481_v12  ;;  %v1482_v31 = vunpack.i.l.bf16 %v1481_v12  ;;  %v2044_v12 = vpop.f32.mrf.mxu3 }
 0x366   : > { %v1478_v19 = vunpack.i.h.bf16 %v1476_v16  ;;  %v1477_v20 = vunpack.i.l.bf16 %v1476_v16 }
 0x367   : > { %v923_v37 = vsel %vm490_vm5, %v1483_v24, %v1487_v22  ;;  %v925_v40 = vsel %vm490_vm5, %v1488_v21, %v1482_v31  ;;  %v924_v44 = vsel %vm490_vm5, %v1482_v31, %v1483_v24 }
 0x368   : > { %v909_v25 = vsel %vm473_vm4, %v1478_v19, %v1472_v14  ;;  %v906_v26 = vsel %vm473_vm4, %v1477_v20, %v1478_v19  ;;  %v907_v27 = vsel %vm473_vm4, %v1473_v13, %v1477_v20  ;;  %v927_v48 = vmax.f32 %v911_v39, %v923_v37  ;;  %v414_v29 = vpop.f32.mrf.mxu1 }
 0x369   : > { %v913_v32 = vmax.f32 %v897_v23, %v906_v26  ;;  %v910_v33 = vmax.f32 %v894_v30, %v909_v25  ;;  %v912_v34 = vmax.f32 %v896_v28, %v907_v27  ;;  %v401_v28 = vpop.f32.mrf.mxu0 }
 0x36b   : > { %v929_v45 = vmax.f32 %v913_v32, %v925_v40  ;;  %v926_v50 = vmax.f32 %v910_v33, %v924_v44  ;;  %v928_v51 = vmax.f32 %v912_v34, %v922_v36  ;;  %v427_v32 = vpop.f32.mrf.mxu2 }
 0x36c   : > { %v1496_v38 = vpop.permute.xlu1 %1495 }
 0x36d   : > { %v1498_v41 = vunpack.i.h.bf16 %v1496_v38  ;;  %v1497_v42 = vunpack.i.l.bf16 %v1496_v38  ;;  %v1491_v43 = vpop.permute.xlu0 %1490  ;;  %v440_v33 = vpop.f32.mrf.mxu3 }
 0x36e   : > { %v1493_v46 = vunpack.i.h.bf16 %v1491_v43  ;;  %v1492_v47 = vunpack.i.l.bf16 %v1491_v43 }
 0x36f   : > { %v938_v49 = vsel %vm507_vm6, %v1497_v42, %v1498_v41 }
 0x370   : > { %v1986_v52 = vmax.f32 %v929_v45, %v938_v49  ;;  %v939_v53 = vsel %vm507_vm6, %v1493_v46, %v1497_v42  ;;  %v940_v54 = vsel %vm507_vm6, %v1492_v47, %v1493_v46  ;;  %v941_v55 = vsel %vm507_vm6, %v1498_v41, %v1492_v47 }
 0x371   : > { %v1994_v56 = vmax.f32 %v926_v50, %v941_v55  ;;  %v1996_v57 = vmax.f32 %v927_v48, %v940_v54  ;;  %v944_v58 = vmax.f32 %v928_v51, %v939_v53  ;;  %v1238_v53 = vld [vmem:[%s2134_s4 + $0xc] sm:$0xf] }
 0x373   : > { %v1509_v59 = vpack.i.bf16 %v944_v58, %v1996_v57  ;;  %v1504_v60 = vpack.i.bf16 %v1996_v57, %v1986_v52  ;;  %v1499_v61 = vpack.i.bf16 %v944_v58, %v1994_v56 }
 0x375   : > { %1510 = vrot.lane.b32.xlu1 %v1509_v59, %s1627_s10  ;;  %1505 = vrot.lane.b32.xlu0 %v1504_v60, %s1626_s9 }
 0x376   : > { %1500 = vrot.lane.b32.xlu2 %v1499_v61, %s1626_s9  ;;  %s1217_s9 = sshll.u32 %s242_s29, 5 }
 0x377   : > { %s244_s14 = scalar_lea.vmem [#allocation3], %s1217_s9 }
 0x378   : > { %s1151_s15 = sshll.u32 %s244_s14, 4  ;;  %s1152_s15 = int_to_ptr.vmem [resolvable:$true] %s1151_s15 }
 0x37d   : > { %984 = vrot.lane.b32.xlu1 %v1986_v52, %s1628_s11  ;;  %1515 = vrot.lane.b32.xlu0 %v1499_v61, %s1628_s11 }
 0x37e   : > { %968 = vrot.lane.b32.xlu2 %v1986_v52, %s1627_s10 }
 0x385   : > { %962 = vrot.lane.b32.xlu1 %v1994_v56, %s1627_s10  ;;  %1000 = vrot.lane.b32.xlu0 %v1986_v52, %s1629_s12  ;;  %s1249_s10 = sshll.u32 %s1686_s25, 5  ;;  %s1138_s25 = scalar_lea.sflag [#allocation4], %s242_s29 }
 0x386   : > { %1520 = vrot.lane.b32.xlu2 %v1509_v59, %s1629_s12  ;;  %s1149_s13 = scalar_lea.hbm %s2136_s6, %s1249_s10 }
 0x387   : > { %s1153_s16 = sshll.u32 %s1149_s13, 4  ;;  %s1154_s16 = int_to_ptr.hbm [resolvable:$true] %s1153_s16 }
 0x388   : > { %s1571_s17 = sshra.s32 %s1154_s16, 4  ;;  %s1572_s17 = int_to_ptr.hbm [resolvable:$true] %s1571_s17 }
 0x389   : > { %s1573_s18 = scalar_lea.hbm %s1572_s17, 32  ;;  %p1578_p0 = scmp.lt.s32.totalorder %s1572_s17, %s2136_s6 }
 0x38a   : > { %p1574_p11 = scmp.ne.s32.totalorder %s1572_s17, %s1573_s18  ;;  %p1579_p1 = scmp.lt.s32.totalorder %s1577_s26, %s1573_s18 }
 0x38c   : > { %p1575_p12 = pnand %p1574_p11, %p1703_p5  ;;  %p1580_p2 = por %p1579_p1, %p1578_p0 }
 0x38d   : > { %994 = vrot.lane.b32.xlu0 %v1994_v56, %s1629_s12  ;;  %1102 = vperm.xlu1 %1524, %v1099_v6  }
 0x38e   : > { %980 = vrot.lane.b32.xlu2 %v1996_v57, %s1628_s11  ;;  %p1576_p13 = pneg %p1575_p12 }
 0x390   : > { %p1581_p3 = pnand %p1580_p2, %p1576_p13 }
 0x3d0   : > { %v1501_v0 = vpop.permute.xlu2 %1500 }
 0x3d1   : > { %v1503_v4 = vunpack.i.h.bf16 %v1501_v0  ;;  %v1502_v13 = vunpack.i.l.bf16 %v1501_v0 }
 0x3d8   : > { %v969_v1 = vpop.permute.xlu2 %968 }
 0x3e0   : > { %v1521_v14 = vpop.permute.xlu2 %1520 }
 0x3e1   : > { %v1523_v19 = vunpack.i.h.bf16 %v1521_v14  ;;  %v1522_v22 = vunpack.i.l.bf16 %v1521_v14  ;;  %v631_v14 = vpop.f32.mrf.mxu1 }
 0x3e3   : > { %v1003_v35 = vsel %vm575_vm10, %v1522_v22, %v1523_v19 }
 0x3e7   : > { %v1511_v2 = vpop.permute.xlu1 %1510  ;;  %v1506_v3 = vpop.permute.xlu0 %1505 }
 0x3e8   : > { %v1507_v5 = vunpack.i.l.bf16 %v1506_v3  ;;  %v1513_v15 = vunpack.i.h.bf16 %v1511_v2  ;;  %v1512_v16 = vunpack.i.l.bf16 %v1511_v2  ;;  %v1508_v30 = vunpack.i.h.bf16 %v1506_v3  ;;  %v981_v59 = vpop.permute.xlu2 %980 }
 0x3ea   : > { %v954_v10 = vsel %vm524_vm7, %v1503_v4, %v1507_v5  ;;  %v957_v18 = vsel %vm524_vm7, %v1507_v5, %v1502_v13  ;;  %v971_v23 = vsel %vm541_vm8, %v1512_v16, %v1513_v15  ;;  %v970_v36 = vsel %vm541_vm8, %v1513_v15, %v969_v1 }
 0x3eb   : > { %v960_v17 = vmax.f32 %v944_v58, %v954_v10  ;;  %v961_v26 = vmax.f32 %v1986_v52, %v957_v18  ;;  %v955_v40 = vsel %vm524_vm7, %v1508_v30, %v1503_v4  ;;  %v956_v41 = vsel %vm524_vm7, %v1502_v13, %v1508_v30  ;;  %v618_v13 = vpop.f32.mrf.mxu0 }
 0x3ec   : > { %v958_v49 = vmax.f32 %v1994_v56, %v956_v41  ;;  %v959_v50 = vmax.f32 %v1996_v57, %v955_v40  ;;  %v661_v8 = vadd.f32 %v618_v13, %v2036_v7  ;;  %v662_v15 = vadd.f32 %v631_v14, %v2038_v9 }
 0x3ed   : > { %v976_v27 = vmax.f32 %v960_v17, %v971_v23  ;;  %v977_v38 = vmax.f32 %v961_v26, %v970_v36  ;;  %v657_v17 = vpop.f32.mrf.mxu3 }
 0x3ef   : > { %v985_v20 = vpop.permute.xlu1 %984  ;;  %v1516_v21 = vpop.permute.xlu0 %1515 }
 0x3f0   : > { %v1518_v24 = vunpack.i.h.bf16 %v1516_v21  ;;  %v1517_v25 = vunpack.i.l.bf16 %v1516_v21  ;;  %v633_v21 = vpop.f32.mrf.mxu1 }
 0x3f2   : > { %v986_v31 = vsel %vm558_vm9, %v1518_v24, %v985_v20  ;;  %v989_v37 = vsel %vm558_vm9, %v985_v20, %v1517_v25  ;;  %v987_v56 = vsel %vm558_vm9, %v981_v59, %v1518_v24  ;;  %v988_v57 = vsel %vm558_vm9, %v1517_v25, %v981_v59 }
 0x3f3   : > { %v992_v34 = vmax.f32 %v976_v27, %v986_v31  ;;  %v993_v44 = vmax.f32 %v977_v38, %v989_v37  ;;  %v620_v20 = vpop.f32.mrf.mxu0 }
 0x3f5   : > { %v1008_v39 = vmax.f32 %v992_v34, %v1003_v35  ;;  %v659_v23 = vpop.f32.mrf.mxu3 }
 0x3f7   : > { %v963_v42 = vpop.permute.xlu1 %962  ;;  %v1001_v43 = vpop.permute.xlu0 %1000  ;;  %v1018_v45 = vpack.c.bf16 %v1008_v39, %v1008_v39 }
 0x3f8   : > { %v972_v46 = vsel %vm541_vm8, %v963_v42, %v1512_v16  ;;  %v973_v47 = vsel %vm541_vm8, %v969_v1, %v963_v42  ;;  %v1002_v48 = vsel %vm575_vm10, %v1523_v19, %v1001_v43  ;;  %v644_v16 = vpop.f32.mrf.mxu2  ;;  %v664_v19 = vadd.f32 %v657_v17, %v2044_v12  ;;  %v844_v25 = vpop.f32.mrf.mxu1 }
 0x3f9   : > { %v1009_v51 = vmax.f32 %v993_v44, %v1002_v48  ;;  %v1030_v52 = vsel %vm377_vm2, %v1018_v45, 0  ;;  %v974_v54 = vmax.f32 %v958_v49, %v973_v47  ;;  %v975_v55 = vmax.f32 %v959_v50, %v972_v46 }
 0x3fa   : > { %1068 = vmatpush.bf16.msra.mxu2 %v1030_v52  ;;  %v663_v18 = vadd.f32 %v644_v16, %v2042_v11  ;;  %v875_v27 = vadd.f32 %v844_v25, %v662_v15 }
 0x3fb   : > { %v1019_v58 = vpack.c.bf16 %v1009_v51, %v1009_v51  ;;  %v990_v62 = vmax.f32 %v974_v54, %v988_v57  ;;  %v991_v63 = vmax.f32 %v975_v55, %v987_v56  ;;  %v831_v24 = vpop.f32.mrf.mxu0 }
 0x3fc   : > { %v874_v26 = vadd.f32 %v831_v24, %v661_v8 }
 0x3fd   : > { %1241 = vmatmul.msk.bf16.vlgmr.msra.gmra.mxu2 %vm373_vm11, %v1238_v53  ;;  %v1033_v60 = vsel %vm377_vm2, %v1019_v58, 0  ;;  %v870_v29 = vpop.f32.mrf.mxu3 }
 0x3fe   : > { %1081 = vmatpush.bf16.msra.mxu3 %v1033_v60  ;;  %v877_v7 = vadd.f32 %v870_v29, %v664_v19 }
 0x3ff   : > { %v995_v61 = vpop.permute.xlu0 %994  ;;  %v1103_v11 = vpop.permute.xlu1 %1102 }
 0x400   : > { %v1004_v0 = vsel %vm575_vm10, %v995_v61, %v1522_v22  ;;  %v1005_v1 = vsel %vm575_vm10, %v1001_v43, %v995_v61  ;;  %v646_v22 = vpop.f32.mrf.mxu2  ;;  %v846_v9 = vpop.f32.mrf.mxu1 }
 0x401   : > { %v1006_v2 = vmax.f32 %v990_v62, %v1005_v1  ;;  %v1007_v3 = vmax.f32 %v991_v63, %v1004_v0  ;;  %1242 = vmatmul.msk.bf16.vlgmr.msra.gmra.mxu3 %vm373_vm11, %v1238_v53 }
 0x403   : > { %v1016_v4 = vpack.c.bf16 %v1006_v2, %v1006_v2  ;;  %v1017_v5 = vpack.c.bf16 %v1007_v3, %v1007_v3  ;;  %v833_v31 = vpop.f32.mrf.mxu0 }
 0x405   : > { %v1024_v6 = vsel %vm377_vm2, %v1016_v4, 0  ;;  %v1027_v10 = vsel %vm377_vm2, %v1017_v5, 0  ;;  %v872_v33 = vpop.f32.mrf.mxu3 }
 0x406   : > { %1042 = vmatpush.bf16.msra.mxu0 %v1024_v6  ;;  %1055 = vmatpush.bf16.msra.mxu1 %v1027_v10 }
 0x408   : > { %v857_v28 = vpop.f32.mrf.mxu2 }
 0x409   : > { %1239 = vmatmul.msk.bf16.vlgmr.msra.gmra.mxu0 %vm373_vm11, %v1238_v53  ;;  %1240 = vmatmul.msk.bf16.vlgmr.msra.gmra.mxu1 %vm373_vm11, %v1238_v53  ;;  %v876_v30 = vadd.f32 %v857_v28, %v663_v18 }
 0x410   : > { %v859_v32 = vpop.f32.mrf.mxu2 }
 0x480   : > { %v1070_v34 = vpop.f32.mrf.mxu2 }
 0x481   : > { %v1089_v35 = vadd.f32 %v1070_v34, %v876_v30 }
 0x483   : > { %v1107_v12 = vadd.f32 %v1103_v11, %v1089_v35 }
 0x484   : > { %v1083_v36 = vpop.f32.mrf.mxu3 }
 0x485   : > { %v1111_v37 = vsub.f32 0.0, %v1107_v12  ;;  %v1090_v38 = vadd.f32 %v1083_v36, %v877_v7 }
 0x486   : > { %v1044_v39 = vpop.f32.mrf.mxu0  ;;  %v1057_v40 = vpop.f32.mrf.mxu1 }
 0x487   : > { %v1117_v41 = vmul.f32 1.442695, %v1111_v37  ;;  %v1108_v42 = vadd.f32 %v1103_v11, %v1090_v38  ;;  %v1087_v43 = vadd.f32 %v1044_v39, %v874_v26  ;;  %v1088_v44 = vadd.f32 %v1057_v40, %v875_v27 }
 0x488   : > { %v1072_v45 = vpop.f32.mrf.mxu2 }
 0x489   : > { %1541 = vpow2.f32 %v1117_v41  ;;  %v1112_v46 = vsub.f32 0.0, %v1108_v42  ;;  %v1105_v47 = vadd.f32 %v1103_v11, %v1087_v43  ;;  %v1106_v48 = vadd.f32 %v1103_v11, %v1088_v44 }
 0x48b   : > { %v1119_v49 = vmul.f32 1.442695, %v1112_v46  ;;  %v1109_v50 = vsub.f32 0.0, %v1105_v47  ;;  %v1110_v51 = vsub.f32 0.0, %v1106_v48 }
 0x48c   : > { %v1085_v52 = vpop.f32.mrf.mxu3 }
 0x48d   : > { %1543 = vpow2.f32 %v1119_v49  ;;  %v1113_v53 = vmul.f32 1.442695, %v1109_v50  ;;  %v1115_v54 = vmul.f32 1.442695, %v1110_v51 }
 0x48e   : > { %v1046_v55 = vpop.f32.mrf.mxu0  ;;  %v1059_v58 = vpop.f32.mrf.mxu1 }
 0x48f   : > { %v1542_v59 = vpop.eup %1541  ;;  %1545 = vpow2.f32 %v1113_v53 }
 0x490   : > { %v1123_v60 = vadd.f32 1.0, %v1542_v59  ;;  %1547 = vpow2.f32 %v1115_v54 }
 0x492   : > { %1549 = vrcp.f32 %v1123_v60 }
 0x493   : > { %v1544_v56 = vpop.eup %1543 }
 0x494   : > { %v1124_v57 = vadd.f32 1.0, %v1544_v56 }
 0x495   : > { %v1546_v61 = vpop.eup %1545 }
 0x496   : > { %v1548_v62 = vpop.eup %1547  ;;  %1551 = vrcp.f32 %v1124_v57  ;;  %v1121_v63 = vadd.f32 1.0, %v1546_v61 }
 0x497   : > { %v1122_v0 = vadd.f32 1.0, %v1548_v62 }
 0x498   : > { %v1550_v1 = vpop.eup %1549  ;;  %1553 = vrcp.f32 %v1121_v63 }
 0x499   : > { %v1131_v2 = vmul.f32 %v1550_v1, %v1107_v12  ;;  %1555 = vrcp.f32 %v1122_v0 }
 0x49b   : > { %1135 = vst [vmem:[%s244_s14 + $0x10] sm:$0xff] %v1131_v2 }
 0x49c   : > { %v1552_v3 = vpop.eup %1551 }
 0x49d   : > { %v1132_v4 = vmul.f32 %v1552_v3, %v1108_v42 }
 0x49e   : > { %v1554_v5 = vpop.eup %1553 }
 0x49f   : > { %v1556_v6 = vpop.eup %1555  ;;  %1136 = vst [vmem:[%s244_s14 + $0x18] sm:$0xff] %v1132_v4  ;;  %v1129_v10 = vmul.f32 %v1554_v5, %v1105_v47 }
 0x4a0   : > { %v1130_v13 = vmul.f32 %v1556_v6, %v1106_v48 }
 0x4a1   : > { %1133 = vst [vmem:[%s244_s14] sm:$0xff] %v1129_v10 }
 0x4a2   : > { %1134 = vst [vmem:[%s244_s14 + $0x8] sm:$0xff] %v1130_v13 }
 0x4a3   : > { %1584 = shalt.err (!%p1581_p3)
}
 0x4a4   : > { %1250 = dma.vmem_to_hbm [thread:$0]  (%p1703_p5), %s1152_s15, 512, %s1154_s16, %s1138_s25  }
 0x4a5 PF: > { %p1256_p4 = scmp.ge.s32.totalorder %s1619_s24, 2  ;;  %s1165_s29 = sand.u32 1, %s1607_s21  }
 0x4a6   : > { %s1166_s10 = scalar_lea.sflag [#allocation4], %s1165_s29 }
 0x4a7   : > { %p1253_p7 = pnand %p1256_p4, %p1707_p6 }
 0x4a9   : > { %p1254_p8 = pneg %p1253_p7 }
 0x4ab   : > { %1602 = dma.done.wait (%p1254_p8), %s1166_s10, 512  }
 0x4ac   : > { %1604 = vsyncadd (%p1254_p8), %s1166_s10, 4294966784  ;;  %p16_p9 = scmp.ge.s32.totalorder %s1690_s27, 4   ;;  %s2139_s21 = smov %s1611_s22 }
 0x4ad   : > { %s2140_s22 = smov %s1615_s23  ;;  %s2141_s23 = smov %s1701_s30 }
 0x4ae   : > { %s2142_s24 = smov %s1690_s27  ;;  %18 = sbr.rel (!%p16_p9) target bundleno = 3 (0x3), region = 82 }
 0x4b3   :  { %1172 = vsyncpa [#allocation4], 1 }
 0x4b4   :  { %1174 = vsyncpa [#allocation4 + $0x1], 1 }

</bundles_post_ra>
